<compile_context>
chip_gen: v7x
topology: tpu7x:2x2x1
jax: 0.10.0
libtpu: 0.0.40
codegen_flags: <defaults>
</compile_context>

<pallas_src>
import functools

import jax
import jax.numpy as jnp
from jax.experimental import pallas as pl
from jax.experimental.pallas import tpu as pltpu


def _round_up(x, m):
    return ((x + m - 1) // m) * m


def _cdiv(a, b):
    return (a + b - 1) // b


def _vmem_capacity_bytes():
    try:
        return int(pltpu.get_tpu_info().vmem_capacity_bytes)
    except Exception:
        return 64 * 1024 * 1024  # conservative: v7x per-TensorCore VMEM


# --------------------------------- kernels ---------------------------------


def _linear_kernel_resident(x_ref, w_ref, b_ref, o_ref):
    # Weight-resident, single K step: no accumulator scratch, no zero-fill,
    # one dot + bias add + cast + store.
    acc = jnp.dot(x_ref[...], w_ref[...], preferred_element_type=jnp.float32)
    o_ref[...] = (acc + b_ref[...].astype(jnp.float32)).astype(o_ref.dtype)


def _linear_kernel_ktiled(x_ref, w_ref, b_ref, o_ref, acc_ref):
    # General tiled GEMM with f32 VMEM accumulator; reduction axis is grid axis 2.
    k = pl.program_id(2)

    @pl.when(k == 0)
    def _():
        # Fold the bias into the accumulator init (the k==0 write touches the
        # whole tile anyway) -> no extra full-tile add in the epilogue.
        acc_ref[...] = jnp.broadcast_to(
            b_ref[...].astype(jnp.float32), acc_ref.shape
        )

    acc_ref[...] += jnp.dot(
        x_ref[...], w_ref[...], preferred_element_type=jnp.float32
    )

    @pl.when(k == pl.num_programs(2) - 1)
    def _():
        o_ref[...] = acc_ref[...].astype(o_ref.dtype)


# --------------------------------- wrapper ---------------------------------


def pallas_linear(
    x2d,
    w,
    b,
    *,
    tm=512,
    tn=256,
    tk=512,
    compute_dtype=None,
    weight_resident=None,   # None = auto, False = force the K-tiled path
    min_pallas_elems=1 << 17,
):
    """y = x2d @ w + b via a Pallas TPU kernel.

    x2d: (M, F);  w: (F, N) (i.e. PyTorch weight.T);  b: (N,).
    """
    M, F = x2d.shape
    Fw, N = w.shape
    assert Fw == F, (Fw, F)
    assert b.shape == (N,), b.shape
    out_dtype = x2d.dtype

    # Tiny problems: pallas_call per-step overhead + padding N to 128 lanes dominates.
    if M * F * N < min_pallas_elems:
        return (
            jnp.dot(x2d, w, preferred_element_type=jnp.float32)
            + b.astype(jnp.float32)
        ).astype(out_dtype)

    # Optional bf16 feed of the MXU (f32 accumulation; bias/output stay f32/out_dtype).
    if compute_dtype is not None:
        xc = x2d.astype(compute_dtype)
        wc = w.astype(compute_dtype)
    else:
        xc, wc = x2d, w
    c_item = jnp.dtype(xc.dtype).itemsize
    o_item = jnp.dtype(out_dtype).itemsize
    sub = 16 if c_item == 2 else 8  # sublane granularity for the row tile

    # Lane-dense (128-multiple) output: pad only W and bias on N (cheap), never x.
    N_pad = _round_up(N, 128)
    wp = wc if N_pad == N else jnp.pad(wc, ((0, 0), (0, N_pad - N)))
    bp = (b if N_pad == N else jnp.pad(b, (0, N_pad - N)))
    bp = bp.astype(jnp.float32).reshape(1, N_pad)

    vmem_cap = _vmem_capacity_bytes()
    vmem_budget = int(0.7 * vmem_cap)  # ~45 MiB on v7x, ~90 MiB on v5e/v6e

    # ------------- weight-resident plan: W leaves HBM exactly once -------------
    w_bytes2 = 2 * F * N_pad * c_item  # double-buffered resident weight block
    use_resident = (weight_resident is not False) and (w_bytes2 <= vmem_budget // 2)

    if use_resident:
        tm_r = min(tm, _round_up(M, sub))
        # v7x megacore: make sure the M grid axis has >= 2 blocks when M is large.
        if tm_r > 256 and _cdiv(M, tm_r) < 2:
            tm_r = max(sub, _round_up(tm_r // 2, sub))

        def _tiles_bytes(t):
            return 2 * (t * F * c_item + t * N_pad * o_item + N_pad * 4)

        while tm_r > sub and w_bytes2 + _tiles_bytes(tm_r) > vmem_budget:
            tm_r = max(sub, _round_up(tm_r // 2, sub))
        use_resident = (w_bytes2 + _tiles_bytes(tm_r)) <= vmem_budget

    if use_resident:
        need = w_bytes2 + _tiles_bytes(tm_r)
        vmem_limit = max(16 << 20, min(int(0.85 * vmem_cap), need + (8 << 20)))
        grid = (_cdiv(M, tm_r),)  # ragged last M block: extra rows are discarded

        out = pl.pallas_call(
            _linear_kernel_resident,
            out_shape=jax.ShapeDtypeStruct((M, N_pad), out_dtype),
            grid_spec=pltpu.PrefetchScalarGridSpec(
                num_scalar_prefetch=0,
                grid=grid,
                in_specs=[
                    pl.BlockSpec((tm_r, F), lambda i: (i, 0)),     # x rows (streamed)
                    pl.BlockSpec((F, N_pad), lambda i: (0, 0)),    # W (resident, 1 DMA)
                    pl.BlockSpec((1, N_pad), lambda i: (0, 0)),    # bias (resident)
                ],
                out_specs=pl.BlockSpec((tm_r, N_pad), lambda i: (i, 0)),
            ),
            compiler_params=pltpu.CompilerParams(
                dimension_semantics=("parallel",),
                vmem_limit_bytes=int(vmem_limit),
            ),
            cost_estimate=pl.CostEstimate(
                flops=2 * M * F * N_pad,
                transcendentals=0,
                bytes_accessed=c_item * (M * F + F * N_pad) + o_item * M * N_pad,
            ),
        )(xc, wp, bp)
        return out if N_pad == N else out[:, :N]

    # ---------------- general K-tiled plan (weights too big for VMEM) ----------------
    # tn: 256-aligned when it divides N_pad (MXU-friendly on v6e/v7x) else 128
    # (avoids over-padding N on v5e).  tk: 128/256/512-aligned reduction tile.
    tn_k = tn if (tn % 128 == 0 and N_pad % tn == 0) else 128
    tk_k = min(tk, _round_up(F, 128))
    F_pad = _round_up(F, tk_k)

    tm_k = min(tm, _round_up(M, sub))
    if tm_k > 256 and _cdiv(M, tm_k) < 2:
        tm_k = max(sub, _round_up(tm_k // 2, sub))

    # Zero-pad only along K (zeros are required for a correct accumulator).
    # M stays ragged (out-of-range output rows are discarded by Pallas);
    # N padding lives on W/bias only.
    xp = xc if F_pad == F else jnp.pad(xc, ((0, 0), (0, F_pad - F)))
    wpk = wp if F_pad == F else jnp.pad(wp, ((0, F_pad - F), (0, 0)))

    grid = (_cdiv(M, tm_k), N_pad // tn_k, F_pad // tk_k)

    need = (
        2 * (tm_k * tk_k * c_item + tk_k * tn_k * c_item + tn_k * 4 + tm_k * tn_k * o_item)
        + tm_k * tn_k * 4
    )
    vmem_limit = max(16 << 20, min(int(0.85 * vmem_cap), 4 * need))

    out = pl.pallas_call(
        _linear_kernel_ktiled,
        out_shape=jax.ShapeDtypeStruct((M, N_pad), out_dtype),
        grid_spec=pltpu.PrefetchScalarGridSpec(
            num_scalar_prefetch=0,
            grid=grid,
            in_specs=[
                pl.BlockSpec((tm_k, tk_k), lambda i, j, k: (i, k)),  # x M/K tile
                pl.BlockSpec((tk_k, tn_k), lambda i, j, k: (k, j)),  # W K/N tile
                pl.BlockSpec((1, tn_k), lambda i, j, k: (0, j)),     # bias N tile
            ],
            out_specs=pl.BlockSpec((tm_k, tn_k), lambda i, j, k: (i, j)),
            scratch_shapes=[pltpu.VMEM((tm_k, tn_k), jnp.float32)],
        ),
        compiler_params=pltpu.CompilerParams(
            dimension_semantics=("parallel", "parallel", "arbitrary"),
            vmem_limit_bytes=int(vmem_limit),
        ),
        cost_estimate=pl.CostEstimate(
            flops=2 * M * F_pad * N_pad,
            transcendentals=0,
            bytes_accessed=c_item * (M * F_pad + F_pad * N_pad * _cdiv(M, tm_k))
            + o_item * M * N_pad,
        ),
    )(xp, wpk, bp)
    return out if N_pad == N else out[:, :N]


def time_distributed_linear(x, w, b, *, batch_first=False, **linear_kwargs):
    """Exact semantics of TimeDistributed(nn.Linear(F, N), batch_first).

    x: (..., F). If x.ndim <= 2 the Linear is applied directly. Otherwise x is
    flattened to (-1, F), the Linear is applied, and the result is reshaped back
    following the PyTorch module's view() calls.
    """
    if x.ndim <= 2:
        x2d = x if x.ndim == 2 else x.reshape(1, -1)
        y = pallas_linear(x2d, w, b, **linear_kwargs)
        return y if x.ndim == 2 else y.reshape(-1)

    F = x.shape[-1]
    x_reshape = x.reshape(-1, F)                      # x.contiguous().view(-1, x.size(-1))
    y = pallas_linear(x_reshape, w, b, **linear_kwargs)  # self.module(x_reshape)
    n_out = y.shape[-1]
    if batch_first:
        return y.reshape(x.shape[0], -1, n_out)       # y.view(x.size(0), -1, y.size(-1))
    return y.reshape(-1, x.shape[1], n_out)           # y.view(-1, x.size(1), y.size(-1))


# ----------------------------------- demo -----------------------------------

if __name__ == "__main__":
    key = jax.random.PRNGKey(0)
    keys = jax.random.split(key, 8)

    def make_params(k, F, N):
        kw, kb = jax.random.split(k)
        bound = 1.0 / jnp.sqrt(jnp.float32(F))
        w_pt = jax.random.uniform(kw, (N, F), minval=-bound, maxval=bound, dtype=jnp.float32)
        b_pt = jax.random.uniform(kb, (N,), minval=-bound, maxval=bound, dtype=jnp.float32)
        return w_pt.T, b_pt  # kernel consumes (F, N) = weight.T

    def ref(x, w, b, batch_first):
        F = x.shape[-1]
        y = x.reshape(-1, F) @ w + b
        if batch_first:
            return y.reshape(x.shape[0], -1, y.shape[-1])
        return y.reshape(-1, x.shape[1], y.shape[-1])

    # 1) Main path: weight-resident kernel (seq=16, batch=8, F=64 -> N=128).
    T, B, F, N = 16, 8, 64, 128
    x1 = jax.random.normal(keys[0], (T, B, F), dtype=jnp.float32)
    w1, b1 = make_params(keys[1], F, N)
    fn = jax.jit(functools.partial(time_distributed_linear, batch_first=False))
    y1 = jax.block_until_ready(fn(x1, w1, b1))
    assert y1.shape == (T, B, N), y1.shape
    assert bool(jnp.allclose(y1, ref(x1, w1, b1, False), atol=1e-4, rtol=1e-4))

    # 2) K-tiled path (forced): multiple reduction steps exercise the accumulator kernel.
    T2, B2, F2, N2 = 8, 4, 256, 128
    x2 = jax.random.normal(keys[2], (T2, B2, F2), dtype=jnp.float32)
    w2, b2 = make_params(keys[3], F2, N2)
    fn2 = jax.jit(functools.partial(time_distributed_linear, batch_first=True,
                                    weight_resident=False, tk=128, tn=128))
    y2 = jax.block_until_ready(fn2(x2, w2, b2))
    assert y2.shape == (T2, B2, N2), y2.shape
    assert bool(jnp.allclose(y2, ref(x2, w2, b2, True), atol=1e-4, rtol=1e-4))

    # 3) Ragged M (no x padding): M = 25*4 = 100 rows, weight-resident path.
    T3, B3, F3, N3 = 25, 4, 128, 128
    x3 = jax.random.normal(keys[4], (T3, B3, F3), dtype=jnp.float32)
    w3, b3 = make_params(keys[5], F3, N3)
    y3 = jax.block_until_ready(fn(x3, w3, b3))
    assert y3.shape == (T3, B3, N3), y3.shape
    assert bool(jnp.allclose(y3, ref(x3, w3, b3, False), atol=1e-4, rtol=1e-4))

    # 4) bf16 MXU feed with f32 accumulation (optional fast path).
    fn_bf16 = jax.jit(functools.partial(time_distributed_linear, batch_first=False,
                                        compute_dtype=jnp.bfloat16))
    y4 = jax.block_until_ready(fn_bf16(x1, w1, b1))
    assert y4.shape == (T, B, N), y4.shape
    assert bool(jnp.allclose(y4, ref(x1, w1, b1, False), atol=5e-2, rtol=5e-2))

    # 5) Tiny-problem fallback (original small demo shape) + 2-D input path.
    T5, B5, F5, N5 = 8, 2, 32, 64
    x5 = jax.random.normal(keys[6], (T5, B5, F5), dtype=jnp.float32)
    w5, b5 = make_params(keys[7], F5, N5)
    y5 = jax.block_until_ready(fn(x5, w5, b5))
    assert y5.shape == (T5, B5, N5), y5.shape
    assert bool(jnp.allclose(y5, ref(x5, w5, b5, False), atol=1e-5, rtol=1e-5))
    y5_2d = jax.block_until_ready(
        jax.jit(time_distributed_linear)(x5.reshape(-1, F5), w5, b5))
    assert y5_2d.shape == (T5 * B5, N5), y5_2d.shape

    print("KERNEL_OK")
</pallas_src>

<mosaic_0001>
module attributes {stable_mosaic.version = 11 : i64} {
  func.func @_linear_kernel_resident(%arg0: i32, %arg1: memref<128x64xf32, #tpu.memory_space<vmem>>, %arg2: memref<64x128xf32, #tpu.memory_space<vmem>>, %arg3: memref<1x128xf32, #tpu.memory_space<vmem>>, %arg4: memref<128x128xf32, #tpu.memory_space<vmem>>) attributes {dimension_semantics = [#tpu.dimension_semantics<parallel>], iteration_bounds = array<i64: 1>, scalar_prefetch = 0 : i64, scratch_operands = 0 : i64, tpu.core_type = #tpu.core_type<tc>, window_params = [{transform_indices = @transform_0, window_bounds = array<i64: 128, 64>}, {pipeline_mode = #tpu.pipeline_mode<synchronous>, transform_indices = @transform_1, window_bounds = array<i64: 64, 128>}, {pipeline_mode = #tpu.pipeline_mode<synchronous>, transform_indices = @transform_2, window_bounds = array<i64: 1, 128>}, {transform_indices = @transform_3, window_bounds = array<i64: 128, 128>}]} {
    %c0 = arith.constant 0 : index
    %c0_0 = arith.constant 0 : index
    %0 = vector.load %arg1[%c0, %c0_0] : memref<128x64xf32, #tpu.memory_space<vmem>>, vector<128x64xf32>
    %c0_1 = arith.constant 0 : index
    %c0_2 = arith.constant 0 : index
    %1 = vector.load %arg2[%c0_1, %c0_2] : memref<64x128xf32, #tpu.memory_space<vmem>>, vector<64x128xf32>
    %cst = arith.constant dense<0.000000e+00> : vector<128x128xf32>
    %2 = tpu.matmul %0, %1, %cst {dimension_numbers = #tpu.dot_dimension_numbers<[1], [0], [0], [1], [0, 0, 1, 1], [], []>} : vector<128x64xf32>, vector<64x128xf32>, vector<128x128xf32> -> vector<128x128xf32>
    %c0_3 = arith.constant 0 : index
    %c0_4 = arith.constant 0 : index
    %3 = vector.load %arg3[%c0_3, %c0_4] : memref<1x128xf32, #tpu.memory_space<vmem>>, vector<1x128xf32>
    %4 = vector.broadcast %3 : vector<1x128xf32> to vector<128x128xf32>
    %5 = arith.addf %2, %4 : vector<128x128xf32>
    %c0_5 = arith.constant 0 : index
    %c0_6 = arith.constant 0 : index
    %6 = vector.load %arg4[%c0_5, %c0_6] : memref<128x128xf32, #tpu.memory_space<vmem>>, vector<128x128xf32>
    tpu.vector_store %arg4[%c0_5, %c0_6], %5 {strides = array<i32>} : memref<128x128xf32, #tpu.memory_space<vmem>>, vector<128x128xf32>,
    return
  }
  func.func @transform_0(%arg0: i32) -> (i32, i32) {
    %c0_i32 = arith.constant 0 : i32
    %c0_i32_0 = arith.constant 0 : i32
    return %arg0, %c0_i32 : i32, i32
  }
  func.func @transform_1(%arg0: i32) -> (i32, i32) {
    %c0_i32 = arith.constant 0 : i32
    %c0_i32_0 = arith.constant 0 : i32
    %c0_i32_1 = arith.constant 0 : i32
    return %c0_i32, %c0_i32_0 : i32, i32
  }
  func.func @transform_2(%arg0: i32) -> (i32, i32) {
    %c0_i32 = arith.constant 0 : i32
    %c0_i32_0 = arith.constant 0 : i32
    %c0_i32_1 = arith.constant 0 : i32
    return %c0_i32, %c0_i32_0 : i32, i32
  }
  func.func @transform_3(%arg0: i32) -> (i32, i32) {
    %c0_i32 = arith.constant 0 : i32
    %c0_i32_0 = arith.constant 0 : i32
    return %arg0, %c0_i32 : i32, i32
  }
}

</mosaic_0001>

<bundles_post_ra>
// kernel: time_distributed_linear.1
= control target key start
LH: loop header
LB: loop body
LE: loop exit
PB: predicated region body
PF: predicated region fallthrough
CT: control target
= control target key end

     0   :  { %8 = vsyncpa [#allocation3], 0  ;;  %s573_s0 = inlined_call_operand.hbm [shape: f32[128,64], index: 0, kind: input, shape index: {}]   ;;  %s574_s1 = inlined_call_operand.hbm [shape: f32[64,128], index: 1, kind: input, shape index: {}]   ;;  %s575_s2 = inlined_call_operand.vmem [shape: f32[1,128], index: 2, kind: input, shape index: {}]   ;;  %s576_s3 = inlined_call_operand.hbm [shape: f32[128,128], index: 3, kind: output, shape index: {}]  }
   0x1   :  { %9 = vsyncpa [#allocation6], 0 }
   0x2   :  { %10 = vsyncpa [#allocation4], 0  ;;  %s484_s12 = smov [#allocation2]   ;;  %s412_s16 = scalar_lea.hbm %s573_s0, 2048 }
   0x3   :  { %s16_s13 = sshll.u32 %s484_s12, 4  ;;  %p413_p0 = scmp.ne.s32.totalorder %s573_s0, %s412_s16  ;;  %s17_s13 = int_to_ptr.vmem [resolvable:$true] %s16_s13 }
   0x4   :  { %p416_p1 = scmp.lt.u32.totalorder %s412_s16, %s573_s0 }
   0x6   :  { %p418_p2 = pnand %p416_p1, %p413_p0 }
   0x8   :  { %421 = shalt.err (!%p418_p2)
}
   0x9   :  { %s422_s21 = scalar_lea.vmem %s17_s13, 2048  ;;  %p427_p4 = scmp.lt.s32.totalorder %s17_s13, %s17_s13 }
   0xa   :  { %p423_p3 = scmp.ne.s32.totalorder %s17_s13, %s422_s21  ;;  %p428_p5 = scmp.lt.s32.totalorder %s422_s21, %s422_s21 }
   0xc   :  { %p429_p6 = por %p428_p5, %p427_p4 }
   0xe   :  { %p430_p7 = pnand %p429_p6, %p423_p3 }
  0x10   :  { %433 = shalt.err (!%p430_p7)
}
  0x11   :  { %s485_s22 = smov 128   ;;  %s486_s23 = smov 8  }
  0x12   :  { %22 = dma.hbm_to_vmem [thread:$0]  %s573_s0, 2048, %s17_s13, [#allocation3], %s485_s22, %s485_s22, %s486_s23  }
  0x13   :  { %s487_s26 = smov [#allocation5]   ;;  %s434_s30 = scalar_lea.hbm %s574_s1, 1024 }
  0x14   :  { %s28_s27 = sshll.u32 %s487_s26, 4  ;;  %p435_p8 = scmp.ne.s32.totalorder %s574_s1, %s434_s30  ;;  %s29_s27 = int_to_ptr.vmem [resolvable:$true] %s28_s27 }
  0x15   :  { %p438_p9 = scmp.lt.u32.totalorder %s434_s30, %s574_s1 }
  0x17   :  { %p440_p10 = pnand %p438_p9, %p435_p8 }
  0x19   :  { %443 = shalt.err (!%p440_p10)
}
  0x1a   :  { %s444_s8 = scalar_lea.vmem %s29_s27, 1024  ;;  %p449_p12 = scmp.lt.s32.totalorder %s29_s27, %s29_s27 }
  0x1b   :  { %p445_p11 = scmp.ne.s32.totalorder %s29_s27, %s444_s8  ;;  %p450_p13 = scmp.lt.s32.totalorder %s444_s8, %s444_s8 }
  0x1d   :  { %p451_p0 = por %p450_p13, %p449_p12 }
  0x1f   :  { %p452_p1 = pnand %p451_p0, %p445_p11 }
  0x21   :  { %455 = shalt.err (!%p452_p1)
}
  0x22   :  { %34 = dma.hbm_to_vmem [thread:$0]  %s574_s1, 1024, %s29_s27, [#allocation6], %s485_s22, %s485_s22, %s486_s23  }
  0x23   :  { %478 = dma.done.wait [#allocation3], 2048  }
  0x24   :  { %479 = vsyncadd [#allocation3], 4294965248 }
  0x25   :  { %480 = dma.done.wait [#allocation6], 1024  }
  0x26   :  { %481 = vsyncadd [#allocation6], 4294966272  ;;  %v59_v0 = vld [vmem:[#allocation5] sm:$0xff]  ;;  %v60_v1 = vld [vmem:[#allocation5 + $0x8] sm:$0xff]  ;;  %vm74_vm0 = vcmask 523264  }
  0x27   :  { %v61_v2 = vld [vmem:[#allocation5 + $0x10] sm:$0xff]  ;;  %v383_v3 = vpack.c.bf16 %v60_v1, %v59_v0  ;;  %v62_v4 = vld [vmem:[#allocation5 + $0x18] sm:$0xff]  ;;  %v63_v6 = vld [vmem:[#allocation5 + $0x20] sm:$0xff] }
  0x28   :  { %v387_v5 = vpack.c.bf16 %v62_v4, %v61_v2  ;;  %v64_v7 = vld [vmem:[#allocation5 + $0x28] sm:$0xff]  ;;  %v43_v8 = vld [vmem:[#allocation2] sm:$0xff]  ;;  %v65_v11 = vld [vmem:[#allocation5 + $0x30] sm:$0xff] }
  0x29   :  { %384 = vmatprep.subr.bf16.mxu0 %v383_v3  ;;  %399 = vmatprep.subr.bf16.mxu1 %v383_v3  ;;  %v51_v9 = vld [vmem:[#allocation2 + $0x40] sm:$0xff]  ;;  %v391_v10 = vpack.c.bf16 %v64_v7, %v63_v6  ;;  %v66_v12 = vld [vmem:[#allocation5 + $0x38] sm:$0xff]  ;;  %v44_v14 = vld [vmem:[#allocation2 + $0x8] sm:$0xff] }
  0x2a   :  { %386 = vmatpush3.bf16.msra.mxu0 %v383_v3  ;;  %403 = vmatpush3.bf16.msra.mxu1 %v383_v3  ;;  %v395_v13 = vpack.c.bf16 %v66_v12, %v65_v11  ;;  %v52_v15 = vld [vmem:[#allocation2 + $0x48] sm:$0xff]  ;;  %v45_v16 = vld [vmem:[#allocation2 + $0x10] sm:$0xff]  ;;  %v46_v18 = vld [vmem:[#allocation2 + $0x18] sm:$0xff] }
  0x2b   :  { %388 = vmatprep.subr.bf16.mxu0 %v387_v5  ;;  %400 = vmatprep.subr.bf16.mxu1 %v387_v5  ;;  %v53_v17 = vld [vmem:[#allocation2 + $0x50] sm:$0xff]  ;;  %v54_v19 = vld [vmem:[#allocation2 + $0x58] sm:$0xff]  ;;  %v47_v20 = vld [vmem:[#allocation2 + $0x20] sm:$0xff] }
  0x2c   :  { %359 = vmatprep.mubr.msk.f32.mxu0 %vm74_vm0, %v43_v8  ;;  %371 = vmatprep.mubr.msk.f32.mxu1 %vm74_vm0, %v51_v9  ;;  %v55_v21 = vld [vmem:[#allocation2 + $0x60] sm:$0xff]  ;;  %v48_v22 = vld [vmem:[#allocation2 + $0x28] sm:$0xff]  ;;  %v49_v24 = vld [vmem:[#allocation2 + $0x30] sm:$0xff] }
  0x2d   :  { %v56_v23 = vld [vmem:[#allocation2 + $0x68] sm:$0xff]  ;;  %v57_v25 = vld [vmem:[#allocation2 + $0x70] sm:$0xff]  ;;  %v50_v26 = vld [vmem:[#allocation2 + $0x38] sm:$0xff] }
  0x2e   :  { %390 = vmatpush3.bf16.msra.mxu0 %v387_v5  ;;  %404 = vmatpush3.bf16.msra.mxu1 %v387_v5  ;;  %v58_v27 = vld [vmem:[#allocation2 + $0x78] sm:$0xff]  ;;  %v302_v28 = vld [vmem:[%s575_s2] ss:$0 sm:$0xff]  ;;  %s488_s2 = smov [#allocation7]  }
  0x2f   :  { %392 = vmatprep.subr.bf16.mxu0 %v391_v10  ;;  %401 = vmatprep.subr.bf16.mxu1 %v391_v10  ;;  %s289_s11 = sshll.u32 %s488_s2, 4  ;;  %s290_s11 = int_to_ptr.vmem [resolvable:$true] %s289_s11 }
  0x30   :  { %s456_s12 = scalar_lea.vmem %s290_s11, 2048  ;;  %p461_p3 = scmp.lt.s32.totalorder %s290_s11, %s290_s11 }
  0x31   :  { %p457_p2 = scmp.ne.s32.totalorder %s290_s11, %s456_s12  ;;  %p462_p4 = scmp.lt.s32.totalorder %s456_s12, %s456_s12 }
  0x32   :  { %394 = vmatpush3.bf16.msra.mxu0 %v391_v10  ;;  %405 = vmatpush3.bf16.msra.mxu1 %v391_v10 }
  0x33   :  { %396 = vmatprep.subr.bf16.mxu0 %v395_v13  ;;  %402 = vmatprep.subr.bf16.mxu1 %v395_v13  ;;  %p463_p5 = por %p462_p4, %p461_p3 }
  0x35   :  { %p464_p6 = pnand %p463_p5, %p457_p2 }
  0x36   :  { %398 = vmatpush3.bf16.msra.mxu0 %v395_v13  ;;  %406 = vmatpush3.bf16.msra.mxu1 %v395_v13 }
  0x39   :  { %360 = vmatmul.mubr.msk.f32.vlgmr.msra.gmra.mrb[0].mxu0 %vm74_vm0, %v44_v14  ;;  %372 = vmatmul.mubr.msk.f32.vlgmr.msra.gmra.mrb[0].mxu1 %vm74_vm0, %v52_v15 }
  0x3a   :  { %362 = vmatprep.mubr.msk.f32.mxu0 %vm74_vm0, %v45_v16  ;;  %374 = vmatprep.mubr.msk.f32.mxu1 %vm74_vm0, %v53_v17 }
  0x3d   :  { %363 = vmatmul.mubr.msk.f32.gmra.mrb[2].mxu0 %vm74_vm0, %v46_v18  ;;  %375 = vmatmul.mubr.msk.f32.gmra.mrb[2].mxu1 %vm74_vm0, %v54_v19 }
  0x3e   :  { %365 = vmatprep.mubr.msk.f32.mxu0 %vm74_vm0, %v47_v20  ;;  %377 = vmatprep.mubr.msk.f32.mxu1 %vm74_vm0, %v55_v21 }
  0x41   :  { %366 = vmatmul.mubr.msk.f32.gmra.mrb[4].mxu0 %vm74_vm0, %v48_v22  ;;  %378 = vmatmul.mubr.msk.f32.gmra.mrb[4].mxu1 %vm74_vm0, %v56_v23 }
  0x42   :  { %368 = vmatprep.mubr.msk.f32.mxu0 %vm74_vm0, %v49_v24  ;;  %380 = vmatprep.mubr.msk.f32.mxu1 %vm74_vm0, %v57_v25 }
  0x45   :  { %369 = vmatmul.mubr.msk.f32.gmra.mrb[6].mxu0 %vm74_vm0, %v50_v26  ;;  %381 = vmatmul.mubr.msk.f32.gmra.mrb[6].mxu1 %vm74_vm0, %v58_v27 }
 0x10c   :  { %v361_v29 = vpop.f32.mrb[0].mxu0  ;;  %v373_v30 = vpop.f32.mrb[0].mxu1 }
 0x10d   :  { %v195_v31 = vadd.f32 %v361_v29, %v302_v28  ;;  %v235_v32 = vadd.f32 %v373_v30, %v302_v28  ;;  %v189_v33 = vpop.f32.mrb[1].mxu0  ;;  %v229_v34 = vpop.f32.mrb[1].mxu1 }
 0x10e   :  { %v190_v35 = vadd.f32 %v302_v28, %v189_v33  ;;  %v230_v36 = vadd.f32 %v302_v28, %v229_v34 }
 0x10f   :  { %269 = vst [vmem:[#allocation7 + $0x8] sm:$0xff] %v195_v31  ;;  %277 = vst [vmem:[#allocation7 + $0x48] sm:$0xff] %v235_v32 }
 0x110   :  { %268 = vst [vmem:[#allocation7] sm:$0xff] %v190_v35  ;;  %276 = vst [vmem:[#allocation7 + $0x40] sm:$0xff] %v230_v36  ;;  %v364_v37 = vpop.f32.mrb[2].mxu0  ;;  %v376_v38 = vpop.f32.mrb[2].mxu1 }
 0x111   :  { %v205_v39 = vadd.f32 %v364_v37, %v302_v28  ;;  %v245_v40 = vadd.f32 %v376_v38, %v302_v28  ;;  %v199_v41 = vpop.f32.mrb[3].mxu0  ;;  %v239_v42 = vpop.f32.mrb[3].mxu1 }
 0x112   :  { %v200_v43 = vadd.f32 %v302_v28, %v199_v41  ;;  %v240_v44 = vadd.f32 %v302_v28, %v239_v42 }
 0x113   :  { %271 = vst [vmem:[#allocation7 + $0x18] sm:$0xff] %v205_v39  ;;  %279 = vst [vmem:[#allocation7 + $0x58] sm:$0xff] %v245_v40 }
 0x114   :  { %270 = vst [vmem:[#allocation7 + $0x10] sm:$0xff] %v200_v43  ;;  %278 = vst [vmem:[#allocation7 + $0x50] sm:$0xff] %v240_v44  ;;  %v367_v45 = vpop.f32.mrb[4].mxu0  ;;  %v379_v46 = vpop.f32.mrb[4].mxu1 }
 0x115   :  { %v215_v47 = vadd.f32 %v367_v45, %v302_v28  ;;  %v255_v48 = vadd.f32 %v379_v46, %v302_v28  ;;  %v209_v49 = vpop.f32.mrb[5].mxu0  ;;  %v249_v50 = vpop.f32.mrb[5].mxu1 }
 0x116   :  { %v210_v51 = vadd.f32 %v302_v28, %v209_v49  ;;  %v250_v52 = vadd.f32 %v302_v28, %v249_v50 }
 0x117   :  { %273 = vst [vmem:[#allocation7 + $0x28] sm:$0xff] %v215_v47  ;;  %281 = vst [vmem:[#allocation7 + $0x68] sm:$0xff] %v255_v48 }
 0x118   :  { %272 = vst [vmem:[#allocation7 + $0x20] sm:$0xff] %v210_v51  ;;  %280 = vst [vmem:[#allocation7 + $0x60] sm:$0xff] %v250_v52  ;;  %v370_v53 = vpop.f32.mrb[6].mxu0  ;;  %v382_v54 = vpop.f32.mrb[6].mxu1 }
 0x119   :  { %v225_v55 = vadd.f32 %v370_v53, %v302_v28  ;;  %v265_v56 = vadd.f32 %v382_v54, %v302_v28  ;;  %v219_v57 = vpop.f32.mrb[7].mxu0  ;;  %v259_v58 = vpop.f32.mrb[7].mxu1 }
 0x11a   :  { %v220_v59 = vadd.f32 %v302_v28, %v219_v57  ;;  %v260_v60 = vadd.f32 %v302_v28, %v259_v58 }
 0x11b   :  { %275 = vst [vmem:[#allocation7 + $0x38] sm:$0xff] %v225_v55  ;;  %283 = vst [vmem:[#allocation7 + $0x78] sm:$0xff] %v265_v56 }
 0x11c   :  { %274 = vst [vmem:[#allocation7 + $0x30] sm:$0xff] %v220_v59  ;;  %282 = vst [vmem:[#allocation7 + $0x70] sm:$0xff] %v260_v60 }
 0x11d   :  { %467 = shalt.err (!%p464_p6)
}
 0x11e   :  { %s468_s15 = scalar_lea.hbm %s576_s3, 2048 }
 0x11f   :  { %p469_p7 = scmp.ne.s32.totalorder %s576_s3, %s468_s15  ;;  %p472_p8 = scmp.lt.u32.totalorder %s468_s15, %s576_s3 }
 0x121   :  { %p474_p9 = pnand %p472_p8, %p469_p7 }
 0x123   :  { %477 = shalt.err (!%p474_p9)
}
 0x124   :  { %295 = dma.vmem_to_hbm [thread:$0]  %s290_s11, 2048, %s576_s3, [#allocation4], %s485_s22, %s485_s22, %s486_s23  }
 0x125   :  { %482 = dma.done.wait [#allocation4], 2048  }
 0x126   :  { %483 = vsyncadd [#allocation4], 4294965248 }
 0x127   :  { %299 = vsyncpa [#allocation3], 1 }
 0x128   :  { %300 = vsyncpa [#allocation6], 1 }
 0x129   :  { %301 = vsyncpa [#allocation4], 1 }

</bundles_post_ra>
